<compile_context>
chip_gen: v5e
topology: v5e:2x2
jax: 0.10.0
libtpu: 0.0.40
codegen_flags: <defaults>
</compile_context>

<pallas_src>
from functools import partial

import jax
import jax.numpy as jnp
from jax.experimental import pallas as pl
from jax.experimental.pallas import tpu as pltpu


# ----------------------------------------------------------------------------
# Kernel
# ----------------------------------------------------------------------------
def policy_mlp_kernel(x_ref, w1_ref, b1_ref, w2_ref, b2_ref, w3_ref, b3_ref,
                      out_ref):
    # x_ref:  (TB, S)  bf16 states (natural width, no feature padding)
    # w*_ref: bf16 weights at natural shapes; b*_ref: f32 biases (1, N)
    # out_ref:(TB, A)  f32 action probabilities
    x = x_ref[...]

    # Layer 1: Linear + bias (VPU add) + ReLU
    h1 = jnp.maximum(
        jnp.dot(x, w1_ref[...], preferred_element_type=jnp.float32) + b1_ref[...],
        0.0)

    # Layer 2: Linear + bias + ReLU (cast activations to bf16 for the MXU)
    h2 = jnp.maximum(
        jnp.dot(h1.astype(jnp.bfloat16), w2_ref[...],
                preferred_element_type=jnp.float32) + b2_ref[...],
        0.0)

    # Layer 3: Linear + bias -> logits (TB, A)
    logits = jnp.dot(h2.astype(jnp.bfloat16), w3_ref[...],
                     preferred_element_type=jnp.float32) + b3_ref[...]

    # Numerically-stable softmax over the action dim; exact divide so the
    # probabilities sum to 1 to f32 rounding.
    m = jnp.max(logits, axis=-1, keepdims=True)
    e = jnp.exp(logits - m)
    denom = jnp.sum(e, axis=-1, keepdims=True)
    out_ref[...] = e / denom


# ----------------------------------------------------------------------------
# One-time weight packing (hoisted out of the per-call path)
# ----------------------------------------------------------------------------
def pack_params(params):
    """bf16 weights (halves the resident-weight DMA), f32 biases (tiny)."""
    return {
        "w1": params["w1"].astype(jnp.bfloat16),
        "w2": params["w2"].astype(jnp.bfloat16),
        "w3": params["w3"].astype(jnp.bfloat16),
        "b1": params["b1"].reshape(1, -1).astype(jnp.float32),
        "b2": params["b2"].reshape(1, -1).astype(jnp.float32),
        "b3": params["b3"].reshape(1, -1).astype(jnp.float32),
    }


# ----------------------------------------------------------------------------
# Wrapper
# ----------------------------------------------------------------------------
@partial(jax.jit, static_argnames=("max_tile_b",))
def policy_forward(state, packed, *, max_tile_b=512):
    """state: (B, state_dim) f32. packed: output of pack_params()."""
    B, state_dim = state.shape
    hidden_dim = packed["w1"].shape[1]
    action_dim = packed["w3"].shape[1]

    # Batch tiling: big tiles amortize the ~0.35 us/step overhead; when the
    # padded batch allows it, cap the tile so the grid has >= 2 steps (v7x
    # can then shard the "parallel" axis across its two TensorCores).
    rows = ((B + 7) // 8) * 8
    tb = min(max_tile_b, rows)
    if rows >= 16:
        tb = min(tb, ((rows // 2 + 7) // 8) * 8)
    b_pad = ((rows + tb - 1) // tb) * tb

    # Narrow (natural-width) activation stream in bf16.
    x = jnp.pad(state.astype(jnp.bfloat16), ((0, b_pad - B), (0, 0)))

    out = pl.pallas_call(
        policy_mlp_kernel,
        out_shape=jax.ShapeDtypeStruct((b_pad, action_dim), jnp.float32),
        grid=(b_pad // tb,),
        in_specs=[
            pl.BlockSpec((tb, state_dim), lambda i: (i, 0)),          # streamed
            pl.BlockSpec((state_dim, hidden_dim), lambda i: (0, 0)),  # resident
            pl.BlockSpec((1, hidden_dim), lambda i: (0, 0)),
            pl.BlockSpec((hidden_dim, hidden_dim), lambda i: (0, 0)),
            pl.BlockSpec((1, hidden_dim), lambda i: (0, 0)),
            pl.BlockSpec((hidden_dim, action_dim), lambda i: (0, 0)),
            pl.BlockSpec((1, action_dim), lambda i: (0, 0)),
        ],
        out_specs=pl.BlockSpec((tb, action_dim), lambda i: (i, 0)),
        compiler_params=pltpu.CompilerParams(
            dimension_semantics=("parallel",)),
    )(x, packed["w1"], packed["b1"], packed["w2"], packed["b2"],
      packed["w3"], packed["b3"])

    return out[:B]


# ----------------------------------------------------------------------------
# Param init (matches nn.Linear default init; weights stored as (in, out))
# ----------------------------------------------------------------------------
def init_params(key, state_dim, action_dim, hidden_dim=64):
    ks = jax.random.split(key, 6)

    def linear(kw, kb, fan_in, fan_out):
        bound = 1.0 / jnp.sqrt(jnp.float32(fan_in))
        w = jax.random.uniform(kw, (fan_in, fan_out), jnp.float32, -bound, bound)
        b = jax.random.uniform(kb, (1, fan_out), jnp.float32, -bound, bound)
        return w, b

    w1, b1 = linear(ks[0], ks[1], state_dim, hidden_dim)
    w2, b2 = linear(ks[2], ks[3], hidden_dim, hidden_dim)
    w3, b3 = linear(ks[4], ks[5], hidden_dim, action_dim)
    return {"w1": w1, "b1": b1, "w2": w2, "b2": b2, "w3": w3, "b3": b3}


if __name__ == "__main__":
    # LunarLander-v2: state_dim=8, action_dim=4; small deterministic batch.
    state_dim, action_dim, hidden_dim, batch = 8, 4, 64, 2

    key = jax.random.PRNGKey(0)
    k_params, k_state = jax.random.split(key)
    params = init_params(k_params, state_dim, action_dim, hidden_dim)
    state = jax.random.normal(k_state, (batch, state_dim), jnp.float32)

    packed = pack_params(params)  # one-time packing, outside the per-call path
    probs = jax.block_until_ready(policy_forward(state, packed))

    # Reference in plain JAX (same math as the PyTorch module, full f32).
    def ref(x, p):
        h = jnp.maximum(x @ p["w1"] + p["b1"], 0.0)
        h = jnp.maximum(h @ p["w2"] + p["b2"], 0.0)
        logits = h @ p["w3"] + p["b3"]
        return jax.nn.softmax(logits, axis=-1)

    expected = ref(state, params)

    assert probs.shape == (batch, action_dim)
    # Exact divide in the kernel -> rows sum to 1 up to f32 rounding.
    assert jnp.allclose(jnp.sum(probs, axis=-1), 1.0, atol=1e-5)
    # bf16 weights/activations with f32 accumulation vs. full-f32 reference.
    assert jnp.allclose(probs, expected, atol=2e-2), "mismatch vs reference"
    print("KERNEL_OK")
</pallas_src>

<mosaic_0001>
module attributes {stable_mosaic.version = 11 : i64} {
  func.func @policy_mlp_kernel(%arg0: i32, %arg1: memref<8x8xbf16, #tpu.memory_space<vmem>>, %arg2: memref<8x64xbf16, #tpu.memory_space<vmem>>, %arg3: memref<1x64xf32, #tpu.memory_space<vmem>>, %arg4: memref<64x64xbf16, #tpu.memory_space<vmem>>, %arg5: memref<1x64xf32, #tpu.memory_space<vmem>>, %arg6: memref<64x4xbf16, #tpu.memory_space<vmem>>, %arg7: memref<1x4xf32, #tpu.memory_space<vmem>>, %arg8: memref<8x4xf32, #tpu.memory_space<vmem>>) attributes {dimension_semantics = [#tpu.dimension_semantics<parallel>], iteration_bounds = array<i64: 1>, scalar_prefetch = 0 : i64, scratch_operands = 0 : i64, tpu.core_type = #tpu.core_type<tc>, window_params = [{transform_indices = @transform_0, window_bounds = array<i64: 8, 8>}, {pipeline_mode = #tpu.pipeline_mode<synchronous>, transform_indices = @transform_1, window_bounds = array<i64: 8, 64>}, {pipeline_mode = #tpu.pipeline_mode<synchronous>, transform_indices = @transform_2, window_bounds = array<i64: 1, 64>}, {pipeline_mode = #tpu.pipeline_mode<synchronous>, transform_indices = @transform_3, window_bounds = array<i64: 64, 64>}, {pipeline_mode = #tpu.pipeline_mode<synchronous>, transform_indices = @transform_4, window_bounds = array<i64: 1, 64>}, {pipeline_mode = #tpu.pipeline_mode<synchronous>, transform_indices = @transform_5, window_bounds = array<i64: 64, 4>}, {pipeline_mode = #tpu.pipeline_mode<synchronous>, transform_indices = @transform_6, window_bounds = array<i64: 1, 4>}, {transform_indices = @transform_7, window_bounds = array<i64: 8, 4>}]} {
    %c0 = arith.constant 0 : index
    %c0_0 = arith.constant 0 : index
    %0 = vector.load %arg1[%c0, %c0_0] : memref<8x8xbf16, #tpu.memory_space<vmem>>, vector<8x8xbf16>
    %c0_1 = arith.constant 0 : index
    %c0_2 = arith.constant 0 : index
    %1 = vector.load %arg2[%c0_1, %c0_2] : memref<8x64xbf16, #tpu.memory_space<vmem>>, vector<8x64xbf16>
    %cst = arith.constant dense<0.000000e+00> : vector<8x64xf32>
    %2 = tpu.matmul %0, %1, %cst {dimension_numbers = #tpu.dot_dimension_numbers<[1], [0], [0], [1], [0, 0, 1, 1], [], []>} : vector<8x8xbf16>, vector<8x64xbf16>, vector<8x64xf32> -> vector<8x64xf32>
    %c0_3 = arith.constant 0 : index
    %c0_4 = arith.constant 0 : index
    %3 = vector.load %arg3[%c0_3, %c0_4] : memref<1x64xf32, #tpu.memory_space<vmem>>, vector<1x64xf32>
    %4 = vector.broadcast %3 : vector<1x64xf32> to vector<8x64xf32>
    %5 = arith.addf %2, %4 : vector<8x64xf32>
    %cst_5 = arith.constant 0.000000e+00 : f32
    %6 = vector.broadcast %cst_5 : f32 to vector<8x64xf32>
    %7 = arith.maximumf %5, %6 : vector<8x64xf32>
    %8 = arith.truncf %7 : vector<8x64xf32> to vector<8x64xbf16>
    %c0_6 = arith.constant 0 : index
    %c0_7 = arith.constant 0 : index
    %9 = vector.load %arg4[%c0_6, %c0_7] : memref<64x64xbf16, #tpu.memory_space<vmem>>, vector<64x64xbf16>
    %cst_8 = arith.constant dense<0.000000e+00> : vector<8x64xf32>
    %10 = tpu.matmul %8, %9, %cst_8 {dimension_numbers = #tpu.dot_dimension_numbers<[1], [0], [0], [1], [0, 0, 1, 1], [], []>} : vector<8x64xbf16>, vector<64x64xbf16>, vector<8x64xf32> -> vector<8x64xf32>
    %c0_9 = arith.constant 0 : index
    %c0_10 = arith.constant 0 : index
    %11 = vector.load %arg5[%c0_9, %c0_10] : memref<1x64xf32, #tpu.memory_space<vmem>>, vector<1x64xf32>
    %12 = vector.broadcast %11 : vector<1x64xf32> to vector<8x64xf32>
    %13 = arith.addf %10, %12 : vector<8x64xf32>
    %cst_11 = arith.constant 0.000000e+00 : f32
    %14 = vector.broadcast %cst_11 : f32 to vector<8x64xf32>
    %15 = arith.maximumf %13, %14 : vector<8x64xf32>
    %16 = arith.truncf %15 : vector<8x64xf32> to vector<8x64xbf16>
    %c0_12 = arith.constant 0 : index
    %c0_13 = arith.constant 0 : index
    %17 = vector.load %arg6[%c0_12, %c0_13] : memref<64x4xbf16, #tpu.memory_space<vmem>>, vector<64x4xbf16>
    %cst_14 = arith.constant dense<0.000000e+00> : vector<8x4xf32>
    %18 = tpu.matmul %16, %17, %cst_14 {dimension_numbers = #tpu.dot_dimension_numbers<[1], [0], [0], [1], [0, 0, 1, 1], [], []>} : vector<8x64xbf16>, vector<64x4xbf16>, vector<8x4xf32> -> vector<8x4xf32>
    %c0_15 = arith.constant 0 : index
    %c0_16 = arith.constant 0 : index
    %19 = vector.load %arg7[%c0_15, %c0_16] : memref<1x4xf32, #tpu.memory_space<vmem>>, vector<1x4xf32>
    %20 = vector.broadcast %19 : vector<1x4xf32> to vector<8x4xf32>
    %21 = arith.addf %18, %20 : vector<8x4xf32>
    %cst_17 = arith.constant dense<0xFF800000> : vector<8xf32>
    %22 = vector.multi_reduction <maximumf>, %21, %cst_17 [1] : vector<8x4xf32> to vector<8xf32>
    %23 = vector.shape_cast %22 : vector<8xf32> to vector<8x1xf32>
    %24 = vector.broadcast %23 : vector<8x1xf32> to vector<8x4xf32>
    %25 = arith.subf %21, %24 : vector<8x4xf32>
    %26 = math.exp %25 : vector<8x4xf32>
    %cst_18 = arith.constant dense<0.000000e+00> : vector<8xf32>
    %27 = vector.multi_reduction <add>, %26, %cst_18 [1] : vector<8x4xf32> to vector<8xf32>
    %28 = vector.shape_cast %27 : vector<8xf32> to vector<8x1xf32>
    %29 = vector.broadcast %28 : vector<8x1xf32> to vector<8x4xf32>
    %30 = arith.divf %26, %29 : vector<8x4xf32>
    %c0_19 = arith.constant 0 : index
    %c0_20 = arith.constant 0 : index
    %31 = vector.load %arg8[%c0_19, %c0_20] : memref<8x4xf32, #tpu.memory_space<vmem>>, vector<8x4xf32>
    tpu.vector_store %arg8[%c0_19, %c0_20], %30 {strides = array<i32>} : memref<8x4xf32, #tpu.memory_space<vmem>>, vector<8x4xf32>,
    return
  }
  func.func @transform_0(%arg0: i32) -> (i32, i32) {
    %c0_i32 = arith.constant 0 : i32
    %c0_i32_0 = arith.constant 0 : i32
    return %arg0, %c0_i32 : i32, i32
  }
  func.func @transform_1(%arg0: i32) -> (i32, i32) {
    %c0_i32 = arith.constant 0 : i32
    %c0_i32_0 = arith.constant 0 : i32
    %c0_i32_1 = arith.constant 0 : i32
    return %c0_i32, %c0_i32_0 : i32, i32
  }
  func.func @transform_2(%arg0: i32) -> (i32, i32) {
    %c0_i32 = arith.constant 0 : i32
    %c0_i32_0 = arith.constant 0 : i32
    %c0_i32_1 = arith.constant 0 : i32
    return %c0_i32, %c0_i32_0 : i32, i32
  }
  func.func @transform_3(%arg0: i32) -> (i32, i32) {
    %c0_i32 = arith.constant 0 : i32
    %c0_i32_0 = arith.constant 0 : i32
    %c0_i32_1 = arith.constant 0 : i32
    return %c0_i32, %c0_i32_0 : i32, i32
  }
  func.func @transform_4(%arg0: i32) -> (i32, i32) {
    %c0_i32 = arith.constant 0 : i32
    %c0_i32_0 = arith.constant 0 : i32
    %c0_i32_1 = arith.constant 0 : i32
    return %c0_i32, %c0_i32_0 : i32, i32
  }
  func.func @transform_5(%arg0: i32) -> (i32, i32) {
    %c0_i32 = arith.constant 0 : i32
    %c0_i32_0 = arith.constant 0 : i32
    %c0_i32_1 = arith.constant 0 : i32
    return %c0_i32, %c0_i32_0 : i32, i32
  }
  func.func @transform_6(%arg0: i32) -> (i32, i32) {
    %c0_i32 = arith.constant 0 : i32
    %c0_i32_0 = arith.constant 0 : i32
    %c0_i32_1 = arith.constant 0 : i32
    return %c0_i32, %c0_i32_0 : i32, i32
  }
  func.func @transform_7(%arg0: i32) -> (i32, i32) {
    %c0_i32 = arith.constant 0 : i32
    %c0_i32_0 = arith.constant 0 : i32
    return %arg0, %c0_i32 : i32, i32
  }
}

</mosaic_0001>

<bundles_post_ra>
// kernel: policy_forward.1
= control target key start
LH: loop header
LB: loop body
LE: loop exit
PB: predicated region body
PF: predicated region fallthrough
CT: control target
= control target key end

     0   :  { %vm37_vm0 = vcmask 1043456   ;;  %vm33_vm1 = vcmask 64512   ;;  %vm92_vm2 = vcmask 523264   ;;  %vm163_vm3 = vcmask 31744   ;;  %s328_s1 = inlined_call_operand.vmem [shape: bf16[8,64], index: 1, kind: input, shape index: {}]   ;;  %s329_s0 = inlined_call_operand.vmem [shape: bf16[8,8], index: 0, kind: input, shape index: {}]   ;;  %s330_s3 = inlined_call_operand.vmem [shape: bf16[64,64], index: 3, kind: input, shape index: {}]   ;;  %s331_s2 = inlined_call_operand.vmem [shape: f32[1,64], index: 2, kind: input, shape index: {}]   ;;  %s332_s4 = inlined_call_operand.vmem [shape: f32[1,64], index: 4, kind: input, shape index: {}]   ;;  %s333_s5 = inlined_call_operand.vmem [shape: bf16[64,4], index: 5, kind: input, shape index: {}]   ;;  %s334_s6 = inlined_call_operand.vmem [shape: f32[1,4], index: 6, kind: input, shape index: {}]   ;;  %s335_s7 = inlined_call_operand.vmem [shape: f32[8,4], index: 7, kind: output, shape index: {}]  }
   0x1   :  { %v28_v0 = vld [vmem:[%s328_s1] sm:$0xf]  ;;  %v231_v1 = vld [vmem:[%s330_s3 + $0x18] sm:$0xff]  ;;  %v230_v4 = vld [vmem:[%s330_s3 + $0x10] sm:$0xff] }
   0x2   :  { %v39_v2 = vsel %vm37_vm0, %v28_v0, 0  ;;  %v27_v3 = vld [vmem:[%s329_s0] sm:$0xf]  ;;  %100 = vmatpush.bf16.msra.mxu1 %v231_v1  ;;  %v229_v5 = vld [vmem:[%s330_s3 + $0x8] sm:$0xff]  ;;  %v235_v7 = vld [vmem:[%s333_s5 + $0x18] sm:$0xff] }
   0x3   :  { %48 = vmatpush.bf16.msra.mxu0 %v39_v2  ;;  %v228_v6 = vld [vmem:[%s330_s3] sm:$0xff]  ;;  %154 = vmatpush.bf16.msra.mxu2 %v235_v7  ;;  %v234_v8 = vld [vmem:[%s333_s5 + $0x10] sm:$0xff]  ;;  %v233_v15 = vld [vmem:[%s333_s5 + $0x8] sm:$0xff] }
   0x4   :  { %v236_v9 = vld [vmem:[%s331_s2] ss:$0 sm:$0xff] }
   0x5   :  { %v232_v16 = vld [vmem:[%s333_s5] sm:$0xff] }
   0x6   :  { %193 = vmatmul.msk.bf16.vlgmr.msra.gmra.mxu0 %vm33_vm1, %v27_v3  ;;  %101 = vmatpush.bf16.msra.mxu1 %v230_v4  ;;  %v237_v17 = vld [vmem:[%s332_s4] ss:$0 sm:$0xff] }
   0x7   :  { %155 = vmatpush.bf16.msra.mxu2 %v234_v8  ;;  %v238_v23 = vld [vmem:[%s334_s6] ss:$0 sm:$0xff] }
   0xa   :  { %102 = vmatpush.bf16.msra.mxu1 %v229_v5 }
   0xb   :  { %156 = vmatpush.bf16.msra.mxu2 %v233_v15 }
   0xe   :  { %103 = vmatpush.bf16.msra.mxu1 %v228_v6 }
   0xf   :  { %157 = vmatpush.bf16.msra.mxu2 %v232_v16 }
  0x83   :  { %v50_v10 = vpop.f32.mrf.mxu0 }
  0x84   :  { %v51_v11 = vadd.f32 %v236_v9, %v50_v10 }
  0x86   :  { %v54_v12 = vmax.f32 %v51_v11, 0.0 }
  0x88   :  { %v55_v13 = vpack.c.bf16 %v54_v12, %v54_v12 }
  0x8a   :  { %210 = vmatmul.msk.bf16.vlgmr.msra.gmra.mxu1 %vm92_vm2, %v55_v13 }
  0x8b   :  { %v52_v14 = vpop.f32.mrf.mxu0 }
 0x107   :  { %v105_v18 = vpop.f32.mrf.mxu1 }
 0x108   :  { %v106_v19 = vadd.f32 %v237_v17, %v105_v18 }
 0x10a   :  { %v109_v20 = vmax.f32 %v106_v19, 0.0 }
 0x10c   :  { %v110_v21 = vpack.c.bf16 %v109_v20, %v109_v20 }
 0x10e   :  { %227 = vmatmul.msk.bf16.vlgmr.msra.gmra.mxu2 %vm92_vm2, %v110_v21 }
 0x10f   :  { %v107_v22 = vpop.f32.mrf.mxu1 }
 0x191   :  { %v159_v24 = vpop.f32.mrf.mxu2 }
 0x192   :  { %v160_v25 = vadd.f32 %v238_v23, %v159_v24 }
 0x194   :  { %v164_v26 = vsel %vm163_vm3, %v160_v25, -inf }
 0x195   :  { %165 = vmax.xlane.f32.xlu0 %v164_v26 }
 0x199   :  { %v161_v27 = vpop.f32.mrf.mxu2 }
 0x208   :  { %v166_v28 = vpop.xlane.xlu0 %165 }
 0x209   :  { %v167_v29 = vsub.f32 %v160_v25, %v166_v28 }
 0x20b   :  { %v168_v30 = vmul.f32 1.442695, %v167_v29 }
 0x20d   :  { %239 = vpow2.f32 %v168_v30 }
 0x213   :  { %v240_v31 = vpop.eup %239 }
 0x214   :  { %v170_v32 = vsel %vm163_vm3, %v240_v31, 0.0 }
 0x215   :  { %171 = vadd.xlane.f32.xlu0 %v170_v32 }
 0x288   :  { %v172_v33 = vpop.xlane.xlu0 %171 }
 0x289   :  { %241 = vrcp.f32 %v172_v33  ;;  %v184_v37 = vand.u32 2147483648, %v172_v33  ;;  %v182_v39 = vand.u32 2147483647, %v172_v33  ;;  %vm178_vm5 = vweird.f32 %v172_v33 }
 0x28b   :  { %v185_v41 = vor.u32 1.1754944e-38, %v184_v37  ;;  %vm183_vm7 = vcmp.eq.f32.partialorder %v182_v39, 8.507059e+37 }
 0x28f   :  { %v242_v34 = vpop.eup %241 }
 0x290   :  { %v174_v35 = vmul.f32 %v242_v34, %v172_v33  ;;  %vm179_vm4 = vweird.f32 %v242_v34 }
 0x291   :  { %vm180_vm6 = vmor %vm178_vm5, %vm179_vm4 }
 0x292   :  { %v175_v36 = vsub.f32 1.0, %v174_v35 }
 0x294   :  { %v176_v38 = vmul.f32 %v242_v34, %v175_v36 }
 0x296   :  { %v177_v40 = vadd.f32 %v242_v34, %v176_v38 }
 0x298   :  { %v181_v42 = vsel %vm180_vm6, %v242_v34, %v177_v40 }
 0x299   :  { %v186_v43 = vsel %vm183_vm7, %v185_v41, %v181_v42 }
 0x29a   :  { %v187_v44 = vmul.f32 %v240_v31, %v186_v43 }
 0x29c   :  { %188 = vst.msk [vmem:[%s335_s7] sm:$0xff] %vm163_vm3, %v187_v44 }

</bundles_post_ra>
